<compile_context>
chip_gen: v6e
topology: v6e:2x2x1
jax: 0.10.0
libtpu: 0.0.40
codegen_flags: <defaults>
</compile_context>

<pallas_src>
import math

import jax
import jax.numpy as jnp
from jax.experimental import pallas as pl
from jax.experimental.pallas import tpu as pltpu


def _round_up(x: int, m: int) -> int:
    return (x + m - 1) // m * m


def _make_ensemble_kernel(num_models: int, kv_tiles: int, tv: int):
    log_m = math.log(float(num_models))

    def kernel(x_ref, w_ref, b_ref, probs_ref,
               logits_sc, s_sc, pmax_sc, psum_sc):
        m = pl.program_id(0)   # ensemble (model) axis
        j = pl.program_id(1)   # vocab-tile axis

        # ---- cross-model state init (probs_ref doubles as the running max) ----
        @pl.when((m == 0) & (j == 0))
        def _init_ensemble():
            probs_ref[...] = jnp.full(probs_ref.shape, -jnp.inf, probs_ref.dtype)
            s_sc[...] = jnp.zeros(s_sc.shape, s_sc.dtype)

        # ---- per-model online-softmax state init ----
        @pl.when(j == 0)
        def _init_model():
            pmax_sc[...] = jnp.full(pmax_sc.shape, -jnp.inf, pmax_sc.dtype)
            psum_sc[...] = jnp.zeros(psum_sc.shape, psum_sc.dtype)

        # ---- decoder head for this vocab tile: bf16 MXU matmul, f32 accum ----
        # (temperature is already folded into x and b by the wrapper)
        lt = jnp.dot(x_ref[...], w_ref[...],
                     preferred_element_type=jnp.float32) + b_ref[...]
        logits_sc[j] = lt                                  # stash for the fold

        # ---- per-model online max / sum-exp over vocab tiles ----
        tile_max = jnp.max(lt, axis=-1, keepdims=True)
        new_pm = jnp.maximum(pmax_sc[...], tile_max)
        psum_sc[...] = (psum_sc[...] * jnp.exp(pmax_sc[...] - new_pm)
                        + jnp.sum(jnp.exp(lt - new_pm), axis=-1, keepdims=True))
        pmax_sc[...] = new_pm

        # ---- last vocab tile of this model: fold this model's log_softmax
        #      into the cross-model online logsumexp (static unroll) ----
        @pl.when(j == kv_tiles - 1)
        def _fold_model():
            lse = pmax_sc[...] + jnp.log(psum_sc[...])     # [B, 1]
            for t in range(kv_tiles):                      # static slices only
                sl = slice(t * tv, (t + 1) * tv)
                lp_t = logits_sc[t] - lse                  # log_softmax tile
                cur_max = probs_ref[:, sl]
                new_max = jnp.maximum(cur_max, lp_t)
                s_sc[:, sl] = (s_sc[:, sl] * jnp.exp(cur_max - new_max)
                               + jnp.exp(lp_t - new_max))
                probs_ref[:, sl] = new_max

        # ---- very last grid step: finalize avg_probs in place ----
        @pl.when((m == pl.num_programs(0) - 1) & (j == kv_tiles - 1))
        def _finalize():
            probs_ref[...] = probs_ref[...] + jnp.log(s_sc[...]) - log_m

    return kernel


def ensemble_forward_decoder(x, w, b, attn, temperature=1.0,
                             tv=2048, weight_dtype=jnp.bfloat16):
    """x: [B,H], w: [M,H,V], b: [M,1,V], attn: [M,B,S]  ->  ([B,V], [B,S])."""
    M, H, V = w.shape
    B = x.shape[0]
    inv_temp = 1.0 / float(temperature)

    # --- tiling / padding (generation-size knobs: tv, weight_dtype) ---
    B_pad = _round_up(max(B, 1), 8)                              # sublane padding
    TV = min(_round_up(int(tv), 128), _round_up(V, 128))         # vocab tile
    V_pad = _round_up(V, TV)
    KV = V_pad // TV

    # --- fold temperature into x and b; quantize the streamed weights ---
    x_p = jnp.pad((x * inv_temp).astype(weight_dtype), ((0, B_pad - B), (0, 0)))
    w_p = jnp.pad(w.astype(weight_dtype), ((0, 0), (0, 0), (0, V_pad - V)))
    # padded vocab columns get a huge negative bias so they never contribute
    b_p = jnp.pad((b * inv_temp).astype(jnp.float32),
                  ((0, 0), (0, 0), (0, V_pad - V)), constant_values=-1e30)

    # --- VMEM budget: size the scoped limit from the shapes, capped by HW ---
    w_itemsize = jnp.dtype(weight_dtype).itemsize
    est = (2 * H * TV * w_itemsize            # double-buffered W tiles
           + 2 * B_pad * H * w_itemsize       # x (resident, tiny)
           + 2 * TV * 4                       # bias tiles
           + 2 * B_pad * V_pad * 4            # resident avg_probs output
           + B_pad * V_pad * 4                # per-model logits scratch
           + B_pad * V_pad * 4                # cross-model sum-exp scratch
           + 4 * B_pad * 4)                   # per-model max / sum-exp
    try:
        vmem_cap = int(pltpu.get_tpu_info().vmem_capacity_bytes)
    except Exception:
        vmem_cap = 64 << 20                   # conservative (v7x per-core VMEM)
    vmem_limit = max(32 << 20, min(int(est * 1.5) + (8 << 20),
                                   vmem_cap - (16 << 20)))

    kernel = _make_ensemble_kernel(M, KV, TV)

    grid_spec = pltpu.PrefetchScalarGridSpec(
        num_scalar_prefetch=0,
        grid=(M, KV),                                   # model outer, vocab tile inner
        in_specs=[
            pl.BlockSpec((B_pad, H), lambda m, j: (0, 0)),            # x (resident)
            pl.BlockSpec((None, H, TV), lambda m, j: (m, 0, j)),      # W[m] tile (bf16 stream)
            pl.BlockSpec((None, 1, TV), lambda m, j: (m, 0, j)),      # b[m] tile
        ],
        out_specs=pl.BlockSpec((B_pad, V_pad), lambda m, j: (0, 0)),  # avg_probs (resident)
        scratch_shapes=[
            pltpu.VMEM((KV, B_pad, TV), jnp.float32),   # current model's raw logits
            pltpu.VMEM((B_pad, V_pad), jnp.float32),    # cross-model running sum-exp
            pltpu.VMEM((B_pad, 1), jnp.float32),        # per-model running max
            pltpu.VMEM((B_pad, 1), jnp.float32),        # per-model running sum-exp
        ],
    )

    avg_probs_padded = pl.pallas_call(
        kernel,
        grid_spec=grid_spec,
        out_shape=jax.ShapeDtypeStruct((B_pad, V_pad), jnp.float32),
        compiler_params=pltpu.CompilerParams(
            dimension_semantics=("arbitrary", "arbitrary"),  # both carry resident state
            vmem_limit_bytes=int(vmem_limit),
        ),
    )(x_p, w_p, b_p)

    avg_probs = avg_probs_padded[:B, :V]
    # avg_attn is O(M*B*S) — trivial next to the W stream; plain JAX avoids a
    # second resident output and masked lane-partial stores.
    avg_attn = jnp.sum(attn, axis=0) * (1.0 / M)
    return avg_probs, avg_attn


def _reference(x, w, b, attn, temperature, weight_dtype=jnp.float32):
    """Pure-JAX fairseq semantics; weight_dtype mirrors the kernel's quantization."""
    inv_t = 1.0 / float(temperature)
    xq = (x * inv_t).astype(weight_dtype).astype(jnp.float32)
    wq = w.astype(weight_dtype).astype(jnp.float32)
    logits = jnp.einsum("bh,mhv->mbv", xq, wq) + b * inv_t   # == (xW + b)/T
    lp = jax.nn.log_softmax(logits, axis=-1)
    avg_probs = jax.nn.logsumexp(lp, axis=0) - math.log(w.shape[0])
    avg_attn = jnp.sum(attn, axis=0) / w.shape[0]
    return avg_probs, avg_attn


if __name__ == "__main__":
    # Small synthetic ensemble: M models, each decoder modeled as a linear head
    # H -> V, plus a per-model last-step attention map over S source positions.
    # V=640 with tv=256 exercises multi-tile streaming + vocab padding; B=2
    # exercises the sublane-padding path.
    M, B, H, V, S = 3, 2, 32, 640, 16
    temperature = 1.5

    key = jax.random.PRNGKey(0)
    kx, kw, kb, ka = jax.random.split(key, 4)
    x = jax.random.normal(kx, (B, H), dtype=jnp.float32)
    w = jax.random.normal(kw, (M, H, V), dtype=jnp.float32) * 0.1
    b = jax.random.normal(kb, (M, 1, V), dtype=jnp.float32) * 0.1
    attn = jax.nn.softmax(jax.random.normal(ka, (M, B, S), dtype=jnp.float32),
                          axis=-1)

    avg_probs, avg_attn = ensemble_forward_decoder(x, w, b, attn, temperature,
                                                   tv=256)
    jax.block_until_ready((avg_probs, avg_attn))

    # Tight check vs. a reference that sees the same bf16-rounded operands.
    ref_probs_q, ref_attn = _reference(x, w, b, attn, temperature,
                                       weight_dtype=jnp.bfloat16)
    assert jnp.allclose(avg_probs, ref_probs_q, atol=2e-4, rtol=2e-4), \
        float(jnp.max(jnp.abs(avg_probs - ref_probs_q)))
    # Loose check vs. the pure-f32 fairseq semantics (bf16 weight-stream error).
    ref_probs_f32, _ = _reference(x, w, b, attn, temperature,
                                  weight_dtype=jnp.float32)
    assert jnp.allclose(avg_probs, ref_probs_f32, atol=5e-2, rtol=5e-3), \
        float(jnp.max(jnp.abs(avg_probs - ref_probs_f32)))
    assert jnp.allclose(avg_attn, ref_attn, atol=1e-6, rtol=1e-6)

    # TODO(synk): forward_encoder / reorder_encoder_out / reorder_incremental_state
    # are pure Python dict/list bookkeeping with no kernel-level compute; not translated.
    print("KERNEL_OK")
</pallas_src>

<mosaic_0001>
module attributes {stable_mosaic.version = 11 : i64} {
  func.func @kernel(%arg0: i32, %arg1: i32, %arg2: memref<8x32xbf16, #tpu.memory_space<vmem>>, %arg3: memref<1x32x256xbf16, #tpu.memory_space<vmem>>, %arg4: memref<1x1x256xf32, #tpu.memory_space<vmem>>, %arg5: memref<8x768xf32, #tpu.memory_space<vmem>>, %arg6: memref<3x8x256xf32, #tpu.memory_space<vmem>>, %arg7: memref<8x768xf32, #tpu.memory_space<vmem>>, %arg8: memref<8x1xf32, #tpu.memory_space<vmem>>, %arg9: memref<8x1xf32, #tpu.memory_space<vmem>>) attributes {dimension_semantics = [#tpu.dimension_semantics<arbitrary>, #tpu.dimension_semantics<arbitrary>], iteration_bounds = array<i64: 3, 3>, scalar_prefetch = 0 : i64, scratch_operands = 4 : i64, tpu.core_type = #tpu.core_type<tc>, window_params = [{pipeline_mode = #tpu.pipeline_mode<synchronous>, transform_indices = @transform_0, window_bounds = array<i64: 8, 32>}, {transform_indices = @transform_1, window_bounds = array<i64: 1, 32, 256>}, {transform_indices = @transform_2, window_bounds = array<i64: 1, 1, 256>}, {pipeline_mode = #tpu.pipeline_mode<synchronous>, transform_indices = @transform_3, window_bounds = array<i64: 8, 768>}]} {
    %c0_i32 = arith.constant 0 : i32
    %0 = arith.cmpi eq, %arg0, %c0_i32 : i32
    %c0_i32_0 = arith.constant 0 : i32
    %1 = arith.cmpi eq, %arg1, %c0_i32_0 : i32
    %2 = arith.andi %0, %1 : i1
    %3 = arith.extui %2 : i1 to i32
    %c0_i32_1 = arith.constant 0 : i32
    %4 = arith.cmpi ne, %3, %c0_i32_1 : i32
    scf.if %4 {
      %cst_29 = arith.constant 0xFF800000 : f32
      %45 = vector.broadcast %cst_29 : f32 to vector<8x768xf32>
      %c0_30 = arith.constant 0 : index
      %c0_31 = arith.constant 0 : index
      %46 = vector.load %arg5[%c0_30, %c0_31] : memref<8x768xf32, #tpu.memory_space<vmem>>, vector<8x768xf32>
      tpu.vector_store %arg5[%c0_30, %c0_31], %45 {strides = array<i32>} : memref<8x768xf32, #tpu.memory_space<vmem>>, vector<8x768xf32>,
      %cst_32 = arith.constant 0.000000e+00 : f32
      %47 = vector.broadcast %cst_32 : f32 to vector<8x768xf32>
      %c0_33 = arith.constant 0 : index
      %c0_34 = arith.constant 0 : index
      %48 = vector.load %arg7[%c0_33, %c0_34] : memref<8x768xf32, #tpu.memory_space<vmem>>, vector<8x768xf32>
      tpu.vector_store %arg7[%c0_33, %c0_34], %47 {strides = array<i32>} : memref<8x768xf32, #tpu.memory_space<vmem>>, vector<8x768xf32>,
    } else {
    }
    %c0_i32_2 = arith.constant 0 : i32
    %5 = arith.cmpi eq, %arg1, %c0_i32_2 : i32
    %6 = arith.extui %5 : i1 to i32
    %c0_i32_3 = arith.constant 0 : i32
    %7 = arith.cmpi ne, %6, %c0_i32_3 : i32
    scf.if %7 {
      %cst_29 = arith.constant 0xFF800000 : f32
      %45 = vector.broadcast %cst_29 : f32 to vector<8x1xf32>
      %c0_30 = arith.constant 0 : index
      %c0_31 = arith.constant 0 : index
      %46 = vector.load %arg8[%c0_30, %c0_31] : memref<8x1xf32, #tpu.memory_space<vmem>>, vector<8x1xf32>
      tpu.vector_store %arg8[%c0_30, %c0_31], %45 {strides = array<i32>} : memref<8x1xf32, #tpu.memory_space<vmem>>, vector<8x1xf32>,
      %cst_32 = arith.constant 0.000000e+00 : f32
      %47 = vector.broadcast %cst_32 : f32 to vector<8x1xf32>
      %c0_33 = arith.constant 0 : index
      %c0_34 = arith.constant 0 : index
      %48 = vector.load %arg9[%c0_33, %c0_34] : memref<8x1xf32, #tpu.memory_space<vmem>>, vector<8x1xf32>
      tpu.vector_store %arg9[%c0_33, %c0_34], %47 {strides = array<i32>} : memref<8x1xf32, #tpu.memory_space<vmem>>, vector<8x1xf32>,
    } else {
    }
    %c0 = arith.constant 0 : index
    %c0_4 = arith.constant 0 : index
    %8 = vector.load %arg2[%c0, %c0_4] : memref<8x32xbf16, #tpu.memory_space<vmem>>, vector<8x32xbf16>
    %c0_5 = arith.constant 0 : index
    %c0_6 = arith.constant 0 : index
    %c0_7 = arith.constant 0 : index
    %9 = vector.load %arg3[%c0_5, %c0_6, %c0_7] : memref<1x32x256xbf16, #tpu.memory_space<vmem>>, vector<1x32x256xbf16>
    %10 = vector.shape_cast %9 : vector<1x32x256xbf16> to vector<32x256xbf16>
    %cst = arith.constant dense<0.000000e+00> : vector<8x256xf32>
    %11 = tpu.matmul %8, %10, %cst {dimension_numbers = #tpu.dot_dimension_numbers<[1], [0], [0], [1], [0, 0, 1, 1], [], []>} : vector<8x32xbf16>, vector<32x256xbf16>, vector<8x256xf32> -> vector<8x256xf32>
    %c0_8 = arith.constant 0 : index
    %c0_9 = arith.constant 0 : index
    %c0_10 = arith.constant 0 : index
    %12 = vector.load %arg4[%c0_8, %c0_9, %c0_10] : memref<1x1x256xf32, #tpu.memory_space<vmem>>, vector<1x1x256xf32>
    %13 = vector.shape_cast %12 : vector<1x1x256xf32> to vector<1x256xf32>
    %14 = vector.broadcast %13 : vector<1x256xf32> to vector<8x256xf32>
    %15 = arith.addf %11, %14 : vector<8x256xf32>
    %16 = arith.index_cast %arg1 : i32 to index
    %c0_11 = arith.constant 0 : index
    %c0_12 = arith.constant 0 : index
    %17 = vector.load %arg6[%16, %c0_11, %c0_12] : memref<3x8x256xf32, #tpu.memory_space<vmem>>, vector<1x8x256xf32>
    %18 = vector.shape_cast %17 : vector<1x8x256xf32> to vector<8x256xf32>
    %19 = vector.shape_cast %15 : vector<8x256xf32> to vector<1x8x256xf32>
    tpu.vector_store %arg6[%16, %c0_11, %c0_12], %19 {strides = array<i32>} : memref<3x8x256xf32, #tpu.memory_space<vmem>>, vector<1x8x256xf32>,
    %cst_13 = arith.constant dense<0xFF800000> : vector<8xf32>
    %20 = vector.multi_reduction <maximumf>, %15, %cst_13 [1] : vector<8x256xf32> to vector<8xf32>
    %21 = vector.shape_cast %20 : vector<8xf32> to vector<8x1xf32>
    %c0_14 = arith.constant 0 : index
    %c0_15 = arith.constant 0 : index
    %22 = vector.load %arg8[%c0_14, %c0_15] : memref<8x1xf32, #tpu.memory_space<vmem>>, vector<8x1xf32>
    %23 = arith.maximumf %22, %21 : vector<8x1xf32>
    %c0_16 = arith.constant 0 : index
    %c0_17 = arith.constant 0 : index
    %24 = vector.load %arg9[%c0_16, %c0_17] : memref<8x1xf32, #tpu.memory_space<vmem>>, vector<8x1xf32>
    %c0_18 = arith.constant 0 : index
    %c0_19 = arith.constant 0 : index
    %25 = vector.load %arg8[%c0_18, %c0_19] : memref<8x1xf32, #tpu.memory_space<vmem>>, vector<8x1xf32>
    %26 = arith.subf %25, %23 : vector<8x1xf32>
    %27 = math.exp %26 : vector<8x1xf32>
    %28 = arith.mulf %24, %27 : vector<8x1xf32>
    %29 = vector.broadcast %23 : vector<8x1xf32> to vector<8x256xf32>
    %30 = arith.subf %15, %29 : vector<8x256xf32>
    %31 = math.exp %30 : vector<8x256xf32>
    %cst_20 = arith.constant dense<0.000000e+00> : vector<8xf32>
    %32 = vector.multi_reduction <add>, %31, %cst_20 [1] : vector<8x256xf32> to vector<8xf32>
    %33 = vector.shape_cast %32 : vector<8xf32> to vector<8x1xf32>
    %34 = arith.addf %28, %33 : vector<8x1xf32>
    %c0_21 = arith.constant 0 : index
    %c0_22 = arith.constant 0 : index
    %35 = vector.load %arg9[%c0_21, %c0_22] : memref<8x1xf32, #tpu.memory_space<vmem>>, vector<8x1xf32>
    tpu.vector_store %arg9[%c0_21, %c0_22], %34 {strides = array<i32>} : memref<8x1xf32, #tpu.memory_space<vmem>>, vector<8x1xf32>,
    %c0_23 = arith.constant 0 : index
    %c0_24 = arith.constant 0 : index
    %36 = vector.load %arg8[%c0_23, %c0_24] : memref<8x1xf32, #tpu.memory_space<vmem>>, vector<8x1xf32>
    tpu.vector_store %arg8[%c0_23, %c0_24], %23 {strides = array<i32>} : memref<8x1xf32, #tpu.memory_space<vmem>>, vector<8x1xf32>,
    %c2_i32 = arith.constant 2 : i32
    %37 = arith.cmpi eq, %arg1, %c2_i32 : i32
    %38 = arith.extui %37 : i1 to i32
    %c0_i32_25 = arith.constant 0 : i32
    %39 = arith.cmpi ne, %38, %c0_i32_25 : i32
    scf.if %39 {
      %c0_29 = arith.constant 0 : index
      %c0_30 = arith.constant 0 : index
      %45 = vector.load %arg8[%c0_29, %c0_30] : memref<8x1xf32, #tpu.memory_space<vmem>>, vector<8x1xf32>
      %c0_31 = arith.constant 0 : index
      %c0_32 = arith.constant 0 : index
      %46 = vector.load %arg9[%c0_31, %c0_32] : memref<8x1xf32, #tpu.memory_space<vmem>>, vector<8x1xf32>
      %47 = math.log %46 : vector<8x1xf32>
      %48 = arith.addf %45, %47 : vector<8x1xf32>
      %c0_33 = arith.constant 0 : index
      %c0_34 = arith.constant 0 : index
      %c0_35 = arith.constant 0 : index
      %49 = vector.load %arg6[%c0_33, %c0_34, %c0_35] : memref<3x8x256xf32, #tpu.memory_space<vmem>>, vector<1x8x256xf32>
      %50 = vector.shape_cast %49 : vector<1x8x256xf32> to vector<8x256xf32>
      %51 = vector.broadcast %48 : vector<8x1xf32> to vector<8x256xf32>
      %52 = arith.subf %50, %51 : vector<8x256xf32>
      %c0_36 = arith.constant 0 : index
      %c0_37 = arith.constant 0 : index
      %53 = vector.load %arg5[%c0_36, %c0_37] : memref<8x768xf32, #tpu.memory_space<vmem>>, vector<8x256xf32>
      %54 = arith.maximumf %53, %52 : vector<8x256xf32>
      %c0_38 = arith.constant 0 : index
      %c0_39 = arith.constant 0 : index
      %55 = vector.load %arg7[%c0_38, %c0_39] : memref<8x768xf32, #tpu.memory_space<vmem>>, vector<8x256xf32>
      %56 = arith.subf %53, %54 : vector<8x256xf32>
      %57 = math.exp %56 : vector<8x256xf32>
      %58 = arith.mulf %55, %57 : vector<8x256xf32>
      %59 = arith.subf %52, %54 : vector<8x256xf32>
      %60 = math.exp %59 : vector<8x256xf32>
      %61 = arith.addf %58, %60 : vector<8x256xf32>
      %c0_40 = arith.constant 0 : index
      %c0_41 = arith.constant 0 : index
      %62 = vector.load %arg7[%c0_40, %c0_41] : memref<8x768xf32, #tpu.memory_space<vmem>>, vector<8x256xf32>
      tpu.vector_store %arg7[%c0_40, %c0_41], %61 {strides = array<i32>} : memref<8x768xf32, #tpu.memory_space<vmem>>, vector<8x256xf32>,
      %c0_42 = arith.constant 0 : index
      %c0_43 = arith.constant 0 : index
      %63 = vector.load %arg5[%c0_42, %c0_43] : memref<8x768xf32, #tpu.memory_space<vmem>>, vector<8x256xf32>
      tpu.vector_store %arg5[%c0_42, %c0_43], %54 {strides = array<i32>} : memref<8x768xf32, #tpu.memory_space<vmem>>, vector<8x256xf32>,
      %c1 = arith.constant 1 : index
      %c0_44 = arith.constant 0 : index
      %c0_45 = arith.constant 0 : index
      %64 = vector.load %arg6[%c1, %c0_44, %c0_45] : memref<3x8x256xf32, #tpu.memory_space<vmem>>, vector<1x8x256xf32>
      %65 = vector.shape_cast %64 : vector<1x8x256xf32> to vector<8x256xf32>
      %66 = vector.broadcast %48 : vector<8x1xf32> to vector<8x256xf32>
      %67 = arith.subf %65, %66 : vector<8x256xf32>
      %c0_46 = arith.constant 0 : index
      %c256 = arith.constant 256 : index
      %68 = vector.load %arg5[%c0_46, %c256] : memref<8x768xf32, #tpu.memory_space<vmem>>, vector<8x256xf32>
      %69 = arith.maximumf %68, %67 : vector<8x256xf32>
      %c0_47 = arith.constant 0 : index
      %c256_48 = arith.constant 256 : index
      %70 = vector.load %arg7[%c0_47, %c256_48] : memref<8x768xf32, #tpu.memory_space<vmem>>, vector<8x256xf32>
      %71 = arith.subf %68, %69 : vector<8x256xf32>
      %72 = math.exp %71 : vector<8x256xf32>
      %73 = arith.mulf %70, %72 : vector<8x256xf32>
      %74 = arith.subf %67, %69 : vector<8x256xf32>
      %75 = math.exp %74 : vector<8x256xf32>
      %76 = arith.addf %73, %75 : vector<8x256xf32>
      %c0_49 = arith.constant 0 : index
      %c256_50 = arith.constant 256 : index
      %77 = vector.load %arg7[%c0_49, %c256_50] : memref<8x768xf32, #tpu.memory_space<vmem>>, vector<8x256xf32>
      tpu.vector_store %arg7[%c0_49, %c256_50], %76 {strides = array<i32>} : memref<8x768xf32, #tpu.memory_space<vmem>>, vector<8x256xf32>,
      %c0_51 = arith.constant 0 : index
      %c256_52 = arith.constant 256 : index
      %78 = vector.load %arg5[%c0_51, %c256_52] : memref<8x768xf32, #tpu.memory_space<vmem>>, vector<8x256xf32>
      tpu.vector_store %arg5[%c0_51, %c256_52], %69 {strides = array<i32>} : memref<8x768xf32, #tpu.memory_space<vmem>>, vector<8x256xf32>,
      %c2 = arith.constant 2 : index
      %c0_53 = arith.constant 0 : index
      %c0_54 = arith.constant 0 : index
      %79 = vector.load %arg6[%c2, %c0_53, %c0_54] : memref<3x8x256xf32, #tpu.memory_space<vmem>>, vector<1x8x256xf32>
      %80 = vector.shape_cast %79 : vector<1x8x256xf32> to vector<8x256xf32>
      %81 = vector.broadcast %48 : vector<8x1xf32> to vector<8x256xf32>
      %82 = arith.subf %80, %81 : vector<8x256xf32>
      %c0_55 = arith.constant 0 : index
      %c512 = arith.constant 512 : index
      %83 = vector.load %arg5[%c0_55, %c512] : memref<8x768xf32, #tpu.memory_space<vmem>>, vector<8x256xf32>
      %84 = arith.maximumf %83, %82 : vector<8x256xf32>
      %c0_56 = arith.constant 0 : index
      %c512_57 = arith.constant 512 : index
      %85 = vector.load %arg7[%c0_56, %c512_57] : memref<8x768xf32, #tpu.memory_space<vmem>>, vector<8x256xf32>
      %86 = arith.subf %83, %84 : vector<8x256xf32>
      %87 = math.exp %86 : vector<8x256xf32>
      %88 = arith.mulf %85, %87 : vector<8x256xf32>
      %89 = arith.subf %82, %84 : vector<8x256xf32>
      %90 = math.exp %89 : vector<8x256xf32>
      %91 = arith.addf %88, %90 : vector<8x256xf32>
      %c0_58 = arith.constant 0 : index
      %c512_59 = arith.constant 512 : index
      %92 = vector.load %arg7[%c0_58, %c512_59] : memref<8x768xf32, #tpu.memory_space<vmem>>, vector<8x256xf32>
      tpu.vector_store %arg7[%c0_58, %c512_59], %91 {strides = array<i32>} : memref<8x768xf32, #tpu.memory_space<vmem>>, vector<8x256xf32>,
      %c0_60 = arith.constant 0 : index
      %c512_61 = arith.constant 512 : index
      %93 = vector.load %arg5[%c0_60, %c512_61] : memref<8x768xf32, #tpu.memory_space<vmem>>, vector<8x256xf32>
      tpu.vector_store %arg5[%c0_60, %c512_61], %84 {strides = array<i32>} : memref<8x768xf32, #tpu.memory_space<vmem>>, vector<8x256xf32>,
    } else {
    }
    %c2_i32_26 = arith.constant 2 : i32
    %40 = arith.cmpi eq, %arg0, %c2_i32_26 : i32
    %c2_i32_27 = arith.constant 2 : i32
    %41 = arith.cmpi eq, %arg1, %c2_i32_27 : i32
    %42 = arith.andi %40, %41 : i1
    %43 = arith.extui %42 : i1 to i32
    %c0_i32_28 = arith.constant 0 : i32
    %44 = arith.cmpi ne, %43, %c0_i32_28 : i32
    scf.if %44 {
      %c0_29 = arith.constant 0 : index
      %c0_30 = arith.constant 0 : index
      %45 = vector.load %arg5[%c0_29, %c0_30] : memref<8x768xf32, #tpu.memory_space<vmem>>, vector<8x768xf32>
      %c0_31 = arith.constant 0 : index
      %c0_32 = arith.constant 0 : index
      %46 = vector.load %arg7[%c0_31, %c0_32] : memref<8x768xf32, #tpu.memory_space<vmem>>, vector<8x768xf32>
      %47 = math.log %46 : vector<8x768xf32>
      %48 = arith.addf %45, %47 : vector<8x768xf32>
      %cst_33 = arith.constant 1.09861231 : f32
      %49 = vector.broadcast %cst_33 : f32 to vector<8x768xf32>
      %50 = arith.subf %48, %49 : vector<8x768xf32>
      %c0_34 = arith.constant 0 : index
      %c0_35 = arith.constant 0 : index
      %51 = vector.load %arg5[%c0_34, %c0_35] : memref<8x768xf32, #tpu.memory_space<vmem>>, vector<8x768xf32>
      tpu.vector_store %arg5[%c0_34, %c0_35], %50 {strides = array<i32>} : memref<8x768xf32, #tpu.memory_space<vmem>>, vector<8x768xf32>,
    } else {
    }
    return
  }
  func.func @transform_0(%arg0: i32, %arg1: i32) -> (i32, i32) {
    %c0_i32 = arith.constant 0 : i32
    %c0_i32_0 = arith.constant 0 : i32
    %c0_i32_1 = arith.constant 0 : i32
    return %c0_i32, %c0_i32_0 : i32, i32
  }
  func.func @transform_1(%arg0: i32, %arg1: i32) -> (i32, i32, i32) {
    %c0_i32 = arith.constant 0 : i32
    %c0_i32_0 = arith.constant 0 : i32
    return %arg0, %c0_i32, %arg1 : i32, i32, i32
  }
  func.func @transform_2(%arg0: i32, %arg1: i32) -> (i32, i32, i32) {
    %c0_i32 = arith.constant 0 : i32
    %c0_i32_0 = arith.constant 0 : i32
    return %arg0, %c0_i32, %arg1 : i32, i32, i32
  }
  func.func @transform_3(%arg0: i32, %arg1: i32) -> (i32, i32) {
    %c0_i32 = arith.constant 0 : i32
    %c0_i32_0 = arith.constant 0 : i32
    %c0_i32_1 = arith.constant 0 : i32
    return %c0_i32, %c0_i32_0 : i32, i32
  }
}

</mosaic_0001>

<bundles_post_ra>
// kernel: tpu_custom_call.1
= control target key start
LH: loop header
LB: loop body
LE: loop exit
PB: predicated region body
PF: predicated region fallthrough
CT: control target
= control target key end

     0   :  { %s1264_s0 = inlined_call_operand.hbm [shape: bf16[8,32], index: 0, kind: input, shape index: {}]   ;;  %s1265_s1 = inlined_call_operand.hbm [shape: bf16[3,32,768], index: 1, kind: input, shape index: {}]   ;;  %s1266_s2 = inlined_call_operand.hbm [shape: f32[3,1,768], index: 2, kind: input, shape index: {}]   ;;  %s1267_s3 = inlined_call_operand.hbm [shape: f32[8,768], index: 3, kind: output, shape index: {}]  }
   0x1   :  { %1270 = sst [smem:[#allocation16_spill]] %s1265_s1 }
   0x2   :  { %8 = vsyncpa [#allocation7], 0 }
   0x3   :  { %9 = vsyncpa [#allocation10], 0 }
   0x4   :  { %11 = vsyncpa [#allocation10 + $0x1], 0 }
   0x5   :  { %12 = vsyncpa [#allocation8], 0  ;;  %s1055_s12 = smov 0   ;;  %s1057_s13 = smov 0  }
   0x6   :  { %s1059_s14 = smov 0   ;;  %s1061_s15 = smov 0  }
   0x7   :  { %s1063_s16 = smov 0   ;;  %s1065_s17 = smov 0  }
   0x8   :  { %s1067_s18 = smov 0   ;;  %s1069_s19 = smov 0  }
   0x9 LB: > { %s27_s20 = sadd.s32 1, %s1012_s17  ;;  %s30_s21 = sadd.s32 1, %s1016_s18  ;;  %s1020_s19 = sphi %s1069_s19, %s18_s19   ;;  %s1016_s18 = sphi %s1067_s18, %s1286_s18   ;;  %s1012_s17 = sphi %s1065_s17, %s1285_s17   ;;  %s1008_s16 = sphi %s1063_s16, %s1284_s16   ;;  %s1004_s15 = sphi %s1061_s15, %s1283_s15   ;;  %s1000_s14 = sphi %s1059_s14, %s1282_s14   ;;  %s996_s13 = sphi %s1057_s13, %s1281_s13   ;;  %s992_s12 = sphi %s1055_s12, %s1280_s12  }
   0xa   : > { %p28_p0 = scmp.ge.s32.totalorder %s27_s20, 3  ;;  %s60_s22 = sadd.s32 1, %s1000_s14 }
   0xb   : > { %p67_p1 = scmp.ne.s32.totalorder %s1000_s14, %s996_s13  ;;  %p68_p2 = scmp.eq.s32.totalorder %s1020_s19, 0 }
   0xc   : > { %s1288_s20 = smov (%p28_p0, %s27_s20), 0  ;;  %s1290_s21 = smov (!%p28_p0, %s30_s21), %s1016_s18 }
   0xd   : > { %s56_s23 = ssub.s32 %s1012_s17, %s1288_s20  ;;  %p1106_p3 = por %p68_p2, %p67_p1 }
   0xe   : > { %p32_p4 = scmp.ge.s32.totalorder %s1290_s21, 3  ;;  %p709_p5 = scmp.lt.s32.totalorder %s1020_s19, 9 }
   0xf   : > { %s157_s25 = sand.u32 1, %s1020_s19   ;;  %s1268_s26 = sand.u32 1, %s1000_s14  }
  0x10   : > { %s1292_s21 = smov (%p32_p4, %s1290_s21), 0  ;;  %s653_s28 = sshll.u32 %s1268_s26, 5 }
  0x11   : > { %s55_s27 = ssub.s32 %s1016_s18, %s1292_s21  ;;  %s654_s30 = sshll.u32 %s1012_s17, 1 }
  0x12   : > { %s57_s29 = sor.u32 %s56_s23, %s55_s27  ;;  %s683_s4 = smul.u32 24, %s1016_s18 }
  0x13   : > { %p58_p6 = scmp.eq.s32.totalorder %s57_s29, 0  ;;  %s161_s5 = scalar_lea.vmem [#allocation9], %s653_s28 }
  0x14   : > { %s170_s6 = sshll.u32 %s161_s5, 4  ;;  %s167_s8 = sadd.s32 %s683_s4, %s654_s30  ;;  %s171_s6 = int_to_ptr.vmem [resolvable:$true] %s170_s6 }
  0x15   : > { %s1122_s7 = scalar_select %p58_p6, %s1000_s14, %s60_s22  }
  0x16   : > { %s655_s9 = sshll.u32 %s167_s8, 6  ;;  %p1130_p7 = pnand %p709_p5, %p1106_p3 }
  0x17   : > { %s1273_s1 = sld [smem:[#allocation16_spill]]  ;;  %s1137_s27 = scalar_lea.sflag [#allocation10], %s157_s25 }
  0x18   : > { %p842_p8 = pneg %p1130_p7  ;;  %s853_s22 = scalar_lea.vmem %s171_s6, 512 }
  0x19   : > { %p854_p9 = scmp.ne.s32.totalorder %s171_s6, %s853_s22  ;;  %s1022_s24 = smov [#allocation9]  }
  0x1a   : > { %s858_s28 = sshll.u32 %s1022_s24, 4  ;;  %s859_s28 = int_to_ptr.vmem [resolvable:$false] %s858_s28 }
  0x1b   : > { %p856_p10 = pnand %p854_p9, %p842_p8  ;;  %s860_s29 = scalar_lea.vmem %s859_s28, 1024 }
  0x1c   : > { %p861_p12 = scmp.lt.s32.totalorder %s171_s6, %s859_s28  ;;  %p862_p13 = scmp.lt.s32.totalorder %s860_s29, %s853_s22 }
  0x1d   : > { %s169_s23 = scalar_lea.hbm %s1273_s1, %s655_s9  ;;  %p857_p11 = pneg %p856_p10 }
  0x1e   : > { %p863_p0 = por %p862_p13, %p861_p12 }
  0x20   : > { %p864_p1 = pnand %p863_p0, %p857_p11 }
  0x22   : > { %867 = shalt.err (!%p864_p1)
}
  0x23   : > { %s1023_s26 = smov 384   ;;  %s1024_s25 = smov 128  }
  0x24   : > { %s1025_s4 = smov 8   ;;  %s1148_s5 = sadd.s32 4294967295, %s1020_s19  }
  0x25   : > { %704 = dma.hbm_to_vmem [thread:$0]  (!%p1130_p7), %s169_s23, 512, %s171_s6, %s1137_s27, %s1023_s26, %s1024_s25, %s1025_s4  }
  0x26   : > { %p73_p2 = scmp.ne.s32.totalorder %s996_s13, %s992_s12  ;;  %p1269_p3 = scmp.eq.s32.totalorder %s1148_s5, 0 }
  0x27   : > { %p650_p4 = scmp.ge.s32.totalorder %s1020_s19, 1  ;;  %p133_p5 = scmp.lt.s32.totalorder %s1020_s19, 10 }
  0x28   : > { %p1157_p6 = por %p1269_p3, %p73_p2  ;;  %s1026_s6 = smov [#allocation6]  }
  0x29   : > { %p1161_p9 = pnand %p650_p4, %p133_p5  ;;  %s146_s11 = sshll.u32 %s1026_s6, 4  ;;  %s147_s11 = int_to_ptr.vmem [resolvable:$true] %s146_s11 }
  0x2a   : > { %s1276_s23 = sand.u32 1, %s1000_s14   ;;  %s684_s12 = smul.u32 6, %s1016_s18 }
  0x2b   : > { %s656_s22 = sshll.u32 %s1276_s23, 1  ;;  %p697_p10 = pneg %p1161_p9 }
  0x2c   : > { %s184_s28 = scalar_lea.vmem [#allocation11], %s656_s22  ;;  %s190_s26 = sadd.s32 %s684_s12, %s654_s30 }
  0x2d   : > { %p1172_p11 = pnand %p697_p10, %p1269_p3  ;;  %s194_s29 = sshll.u32 %s184_s28, 4  ;;  %s195_s29 = int_to_ptr.vmem [resolvable:$true] %s194_s29 }
  0x2e   : > { %s658_s25 = sshll.u32 %s190_s26, 4  ;;  %s879_s4 = scalar_lea.vmem %s147_s11, 64 }
  0x2f   : > { %p870_p12 = pneg %p1172_p11  ;;  %p880_p13 = scmp.ne.s32.totalorder %s147_s11, %s879_s4 }
  0x30   : > { %p887_p2 = scmp.lt.s32.totalorder %s147_s11, %s147_s11  ;;  %p888_p4 = scmp.lt.s32.totalorder %s879_s4, %s879_s4 }
  0x31   : > { %p882_p0 = pnand %p880_p13, %p870_p12 }
  0x32   : > { %p889_p5 = por %p888_p4, %p887_p2 }
  0x33   : > { %p883_p1 = pneg %p882_p0 }
  0x35   : > { %p890_p10 = pnand %p889_p5, %p883_p1 }
  0x37   : > { %893 = shalt.err (!%p890_p10)
}
  0x38   : > { %700 = dma.hbm_to_vmem [thread:$0]  (!%p1172_p11), %s1264_s0, 64, %s147_s11, [#allocation7]  }
  0x39   : > { %s192_s12 = scalar_lea.hbm %s1266_s2, %s658_s25  ;;  %s907_s28 = scalar_lea.vmem %s195_s29, 32 }
  0x3a   : > { %p908_p3 = scmp.ne.s32.totalorder %s195_s29, %s907_s28  ;;  %s1027_s26 = smov [#allocation11]  }
  0x3b   : > { %s912_s4 = sshll.u32 %s1027_s26, 4  ;;  %s913_s4 = int_to_ptr.vmem [resolvable:$false] %s912_s4 }
  0x3c   : > { %p910_p12 = pnand %p908_p3, %p842_p8  ;;  %s914_s1 = scalar_lea.vmem %s913_s4, 64 }
  0x3d   : > { %p915_p0 = scmp.lt.s32.totalorder %s195_s29, %s913_s4  ;;  %p916_p1 = scmp.lt.s32.totalorder %s914_s1, %s907_s28 }
  0x3e   : > { %p911_p13 = pneg %p910_p12 }
  0x3f   : > { %p917_p2 = por %p916_p1, %p915_p0 }
  0x41   : > { %p918_p4 = pnand %p917_p2, %p911_p13 }
  0x43   : > { %921 = shalt.err (!%p918_p4)
}
  0x44   : > { %707 = dma.hbm_to_vmem [thread:$0]  (!%p1130_p7), %s192_s12, 32, %s195_s29, %s1137_s27  }
  0x45   : > { %203 = sbr.rel (%p1161_p9) target bundleno = 976 (0x3d0), region = 32  ;;  %p1278_p11 = scmp.eq.s32.totalorder (!%p1161_p9), %s1148_s5, 0 }
  0x4a   : > { %979 = dma.done.wait (%p1278_p11), [#allocation7], 64   ;;  %p1279_p8 = pmov %p1278_p11 }
  0x4b   : > { %s209_s1 = sand.u32 1, %s1148_s5   ;;  %s211_s11 = sand.u32 1, %s996_s13  }
  0x4c   : > { %981 = vsyncadd (%p1279_p8), [#allocation7], 4294967232  ;;  %s661_s24 = sshll.u32 %s211_s11, 5  ;;  %s210_s25 = scalar_lea.sflag [#allocation10], %s209_s1 }
  0x4d   : > { %s1202_s6 = scalar_lea.vmem [#allocation9], %s661_s24 }
  0x4e   : > { %983 = dma.done.wait (%p1157_p6), %s210_s25, 544  }
  0x4f   : > { %985 = vsyncadd (%p1157_p6), %s210_s25, 4294966752  ;;  %s1208_s10 = sshll.u32 %s211_s11, 1  ;;  %p248_p7 = scmp.eq.s32.totalorder %s1008_s16, 0 }
  0x50   : > { %p249_p3 = scmp.eq.s32.totalorder %s1004_s15, 0  ;;  %s222_s27 = scalar_lea.vmem [#allocation11], %s1208_s10 }
  0x52   : > { %p250_p9 = pnand %p249_p3, %p248_p7 }
  0x54   : > { %253 = sbr.rel (%p250_p9) target bundleno = 96 (0x60), region = 48 }
  0x59   : > { %v1028_v0 = vmov -inf   ;;  %v1029_v1 = vmov 0.0  }
  0x5a   : > { %254 = vst [vmem:[#allocation12] sm:$0xff] %v1028_v0  ;;  %255 = vst [vmem:[#allocation12 + $0x8] sm:$0xff] %v1028_v0 }
  0x5b   : > { %256 = vst [vmem:[#allocation12 + $0x10] sm:$0xff] %v1028_v0  ;;  %257 = vst [vmem:[#allocation12 + $0x18] sm:$0xff] %v1028_v0 }
  0x5c   : > { %258 = vst [vmem:[#allocation12 + $0x20] sm:$0xff] %v1028_v0  ;;  %259 = vst [vmem:[#allocation12 + $0x28] sm:$0xff] %v1028_v0 }
  0x5d   : > { %260 = vst [vmem:[#allocation3 + $0x28] sm:$0xff] %v1029_v1  ;;  %261 = vst [vmem:[#allocation3 + $0x10] sm:$0xff] %v1029_v1 }
  0x5e   : > { %262 = vst [vmem:[#allocation3 + $0x8] sm:$0xff] %v1029_v1  ;;  %263 = vst [vmem:[#allocation3] sm:$0xff] %v1029_v1 }
  0x5f   : > { %264 = vst [vmem:[#allocation3 + $0x18] sm:$0xff] %v1029_v1  ;;  %265 = vst [vmem:[#allocation3 + $0x20] sm:$0xff] %v1029_v1 }
  0x60 PF: > { %p663_p6 = scmp.ne.s32.totalorder %s1004_s15, 0 }
  0x62   : > { %268 = sbr.rel (%p663_p6) target bundleno = 105 (0x69), region = 52 }
  0x67   : > { %vm269_vm0 = vcmask 7168   ;;  %v1030_v2 = vmov -inf   ;;  %v1031_v3 = vmov 0.0  }
  0x68   : > { %270 = vst.msk [vmem:[#allocation4] sm:$0xff] %vm269_vm0, %v1030_v2  ;;  %271 = vst.msk [vmem:[#allocation5] sm:$0xff] %vm269_vm0, %v1031_v3 }
  0x69 PF: > { %v789_v4 = vld [vmem:[%s1202_s6 + $0x14] ss:$8 sps:$4 sm:$0xff]   ;;  %v791_v5 = vld [vmem:[%s1202_s6 + $0x10] ss:$8 sps:$4 sm:$0xff]   ;;  %v1032_v6 = vmov 0   ;;  %vm309_vm1 = vcmask 261120   ;;  %v279_v10 = vlaneseq }
  0x6a   : > { %345 = vmatprep.mubr.bf16.mxu0 %v1032_v6  ;;  %788 = vset.pattern.permute.xlu0 %v1032_v6  ;;  %v792_v7 = vld [vmem:[%s1202_s6 + $0x4] ss:$8 sps:$4 sm:$0xff]   ;;  %v794_v8 = vld [vmem:[%s1202_s6] ss:$8 sps:$4 sm:$0xff]   ;;  %v272_v9 = vld [vmem:[#allocation6] sm:$0xf] }
  0x6b   : > { %325 = vmatprep.subr.bf16.mxu0 %v789_v4  ;;  %v280_v11 = vshrl.u32 %v279_v10, 7  ;;  %v277_v13 = vld [vmem:[%s222_s27] sm:$0x3]  ;;  %s682_s8 = sshll.u32 %s1004_s15, 4  ;;  %vm384_vm2 = vcmask 7168   ;;  %p387_p5 = scmp.eq.s32.totalorder %s1004_s15, 2 }
  0x6c   : > { %326 = vmatpush1.bf16.msra.mxu0 %v791_v5  ;;  %s356_s9 = scalar_lea.vmem [#allocation2], %s682_s8  ;;  %p671_p10 = scmp.ne.s32.totalorder %s1004_s15, 2 }
  0x6d   : > { %327 = vmatprep.subr.bf16.mxu0 %v792_v7  ;;  %v281_v12 = vsub.s32 0, %v280_v11  ;;  %v285_v14 = vsub.s32 1, %v280_v11 }
  0x6f   : > { %v282_v15 = vrot.slane %v277_v13, %v281_v12  ;;  %v286_v16 = vrot.slane %v277_v13, %v285_v14  ;;  %v362_v24 = vld [vmem:[#allocation4] sm:$0xff]  ;;  %v364_v38 = vld [vmem:[#allocation5] sm:$0xff] }
  0x70   : > { %328 = vmatpush1.bf16.msra.mxu0 %v794_v8 }
  0x73   : > { %668 = vmatmul.mubr.msk.bf16.vlgmr.msra.gmra.mxu0 %vm309_vm1, %v272_v9 }
 0x133   : > { %v347_v17 = vpop.f32.mrf.mxu0 }
 0x134   : > { %v348_v18 = vadd.f32 %v347_v17, %v282_v15 }
 0x135   : > { %v349_v19 = vpop.f32.mrf.mxu0 }
 0x136   : > { %357 = vst [vmem:[%s356_s9] sm:$0xff] %v348_v18  ;;  %v350_v20 = vadd.f32 %v349_v19, %v286_v16 }
 0x137   : > { %v351_v21 = vpop.f32.mrf.mxu0 }
 0x138   : > { %358 = vst [vmem:[%s356_s9 + $0x8] sm:$0xff] %v350_v20  ;;  %v359_v22 = vmax.f32 %v348_v18, %v350_v20 }
 0x139   : > { %v352_v23 = vpop.f32.mrf.mxu0 }
 0x13a   : > { %360 = vmax.xlane.f32.xlu0 %v359_v22 }
 0x1c3   : > { %v361_v25 = vpop.xlane.xlu0 %360 }
 0x1c4   : > { %v363_v26 = vmax.f32 %v362_v24, %v361_v25 }
 0x1c6   : > { %v365_v27 = vsub.f32 %v362_v24, %v363_v26  ;;  %386 = vst.msk [vmem:[#allocation4] sm:$0xff] %vm384_vm2, %v363_v26  ;;  %371 = vperm.xlu0 %788, %v363_v26  }
 0x1c8   : > { %v366_v36 = vmul.f32 1.442695, %v365_v27 }
 0x241   : > { %v372_v28 = vpop.permute.xlu0 %371 }
 0x242   : > { %v374_v29 = vsub.f32 %v348_v18, %v372_v28  ;;  %v375_v30 = vsub.f32 %v350_v20, %v372_v28 }
 0x244   : > { %v376_v31 = vmul.f32 1.442695, %v374_v29  ;;  %v378_v32 = vmul.f32 1.442695, %v375_v30 }
 0x246   : > { %795 = vpow2.f32 %v376_v31 }
 0x247   : > { %797 = vpow2.f32 %v378_v32 }
 0x248   : > { %799 = vpow2.f32 %v366_v36 }
 0x253   : > { %v796_v33 = vpop.eup %795 }
 0x254   : > { %v798_v34 = vpop.eup %797 }
 0x255   : > { %v380_v35 = vadd.f32 %v798_v34, %v796_v33  ;;  %v800_v37 = vpop.eup %799 }
 0x256   : > { %v368_v39 = vmul.f32 %v800_v37, %v364_v38 }
 0x257   : > { %381 = vadd.xlane.f32.xlu1 %v380_v35 }
 0x2df   : > { %390 = sbr.rel (%p671_p10) target bundleno = 925 (0x39d), region = 56 }
 0x2e0   : > { %v382_v40 = vpop.xlane.xlu1 %381 }
 0x2e1   : > { %v383_v41 = vadd.f32 %v382_v40, %v368_v39 }
 0x2e3   : > { %385 = vst.msk [vmem:[#allocation5] sm:$0xff] %vm384_vm2, %v383_v41 }
 0x2e4   : > { %v1033_v43 = vmov 0   ;;  %v391_v45 = vld [vmem:[#allocation4] sm:$0xff]  ;;  %v397_v49 = vld [vmem:[#allocation2 + $0x8] sm:$0xff]  ;;  %v432_v50 = vld [vmem:[#allocation2 + $0x10] sm:$0xff] }
 0x2e5   : > { %801 = vset.pattern.permute.xlu0 %v1033_v43  ;;  %v396_v48 = vld [vmem:[#allocation2] sm:$0xff]  ;;  %v433_v51 = vld [vmem:[#allocation2 + $0x18] sm:$0xff]  ;;  %v464_v54 = vld [vmem:[#allocation2 + $0x28] sm:$0xff] }
 0x2e6   : > { %v405_v52 = vld [vmem:[#allocation12] sm:$0xff]  ;;  %v463_v53 = vld [vmem:[#allocation2 + $0x20] sm:$0xff]  ;;  %v436_v56 = vld [vmem:[#allocation12 + $0x10] sm:$0xff] }
 0x2e7   : > { %v406_v55 = vld [vmem:[#allocation12 + $0x8] sm:$0xff]  ;;  %v437_v57 = vld [vmem:[#allocation12 + $0x18] sm:$0xff]  ;;  %v467_v59 = vld [vmem:[#allocation12 + $0x20] sm:$0xff] }
 0x2e8   : > { %v468_v60 = vld [vmem:[#allocation12 + $0x28] sm:$0xff]  ;;  %v409_v33 = vld [vmem:[#allocation3 + $0x28] sm:$0xff] }
 0x2e9   : > { %v410_v34 = vld [vmem:[#allocation3 + $0x10] sm:$0xff]  ;;  %v440_v39 = vld [vmem:[#allocation3 + $0x8] sm:$0xff] }
 0x2ea   : > { %v392_v42 = vld [vmem:[#allocation5] sm:$0xff] }
 0x2eb   : > { %802 = vlog2.f32 %v392_v42  ;;  %v441_v42 = vld [vmem:[#allocation3] sm:$0xff] }
 0x2f8   : > { %v803_v44 = vpop.eup %802 }
 0x2f9   : > { %v394_v46 = vmul.f32 0.6931472, %v803_v44 }
 0x2fb   : > { %v395_v47 = vadd.f32 %v394_v46, %v391_v45 }
 0x2fd   : > { %400 = vperm.xlu0 %801, %v395_v47  }
 0x378   : > { %v401_v58 = vpop.permute.xlu0 %400 }
 0x379   : > { %v403_v61 = vsub.f32 %v396_v48, %v401_v58  ;;  %v404_v62 = vsub.f32 %v397_v49, %v401_v58  ;;  %v434_v63 = vsub.f32 %v432_v50, %v401_v58  ;;  %v435_v0 = vsub.f32 %v433_v51, %v401_v58  ;;  %v471_v49 = vld [vmem:[#allocation3 + $0x18] sm:$0xff] }
 0x37a   : > { %v465_v1 = vsub.f32 %v463_v53, %v401_v58  ;;  %v466_v2 = vsub.f32 %v464_v54, %v401_v58 }
 0x37b   : > { %v407_v3 = vmax.f32 %v405_v52, %v403_v61  ;;  %v408_v4 = vmax.f32 %v406_v55, %v404_v62  ;;  %v438_v5 = vmax.f32 %v436_v56, %v434_v63  ;;  %v439_v6 = vmax.f32 %v437_v57, %v435_v0 }
 0x37c   : > { %v469_v7 = vmax.f32 %v467_v59, %v465_v1  ;;  %v470_v8 = vmax.f32 %v468_v60, %v466_v2 }
 0x37d   : > { %v411_v9 = vsub.f32 %v405_v52, %v407_v3  ;;  %v412_v10 = vsub.f32 %v406_v55, %v408_v4  ;;  %v419_v11 = vsub.f32 %v403_v61, %v407_v3  ;;  %v420_v12 = vsub.f32 %v404_v62, %v408_v4  ;;  %429 = vst [vmem:[#allocation12] sm:$0xff] %v407_v3  ;;  %v472_v52 = vld [vmem:[#allocation3 + $0x20] sm:$0xff] }
 0x37e   : > { %430 = vst [vmem:[#allocation12 + $0x8] sm:$0xff] %v408_v4  ;;  %460 = vst [vmem:[#allocation12 + $0x10] sm:$0xff] %v438_v5  ;;  %v442_v13 = vsub.f32 %v436_v56, %v438_v5  ;;  %v443_v14 = vsub.f32 %v437_v57, %v439_v6  ;;  %v450_v18 = vsub.f32 %v434_v63, %v438_v5 }
 0x37f   : > { %461 = vst [vmem:[#allocation12 + $0x18] sm:$0xff] %v439_v6  ;;  %491 = vst [vmem:[#allocation12 + $0x20] sm:$0xff] %v469_v7  ;;  %v413_v15 = vmul.f32 1.442695, %v411_v9  ;;  %v415_v16 = vmul.f32 1.442695, %v412_v10  ;;  %v451_v20 = vsub.f32 %v435_v0, %v439_v6  ;;  %v473_v22 = vsub.f32 %v467_v59, %v469_v7 }
 0x380   : > { %492 = vst [vmem:[#allocation12 + $0x28] sm:$0xff] %v470_v8  ;;  %v421_v17 = vmul.f32 1.442695, %v419_v11  ;;  %v423_v19 = vmul.f32 1.442695, %v420_v12  ;;  %v474_v24 = vsub.f32 %v468_v60, %v470_v8  ;;  %v481_v26 = vsub.f32 %v465_v1, %v469_v7 }
 0x381   : > { %804 = vpow2.f32 %v413_v15  ;;  %v444_v21 = vmul.f32 1.442695, %v442_v13  ;;  %v446_v23 = vmul.f32 1.442695, %v443_v14  ;;  %v452_v25 = vmul.f32 1.442695, %v450_v18 }
 0x382   : > { %806 = vpow2.f32 %v415_v16  ;;  %v454_v27 = vmul.f32 1.442695, %v451_v20  ;;  %v482_v28 = vsub.f32 %v466_v2, %v470_v8  ;;  %v475_v29 = vmul.f32 1.442695, %v473_v22 }
 0x383   : > { %808 = vpow2.f32 %v421_v17  ;;  %v477_v30 = vmul.f32 1.442695, %v474_v24  ;;  %v483_v31 = vmul.f32 1.442695, %v481_v26 }
 0x384   : > { %810 = vpow2.f32 %v423_v19  ;;  %v485_v32 = vmul.f32 1.442695, %v482_v28 }
 0x385   : > { %812 = vpow2.f32 %v444_v21 }
 0x386   : > { %814 = vpow2.f32 %v446_v23 }
 0x387   : > { %816 = vpow2.f32 %v452_v25 }
 0x388   : > { %818 = vpow2.f32 %v454_v27 }
 0x389   : > { %820 = vpow2.f32 %v475_v29 }
 0x38a   : > { %822 = vpow2.f32 %v477_v30 }
 0x38b   : > { %824 = vpow2.f32 %v483_v31 }
 0x38c   : > { %826 = vpow2.f32 %v485_v32 }
 0x38e   : > { %v805_v35 = vpop.eup %804 }
 0x38f   : > { %v807_v36 = vpop.eup %806  ;;  %v417_v37 = vmul.f32 %v805_v35, %v409_v33 }
 0x390   : > { %v809_v38 = vpop.eup %808  ;;  %v418_v40 = vmul.f32 %v807_v36, %v410_v34 }
 0x391   : > { %v811_v41 = vpop.eup %810  ;;  %v425_v43 = vadd.f32 %v809_v38, %v417_v37 }
 0x392   : > { %v813_v44 = vpop.eup %812  ;;  %v426_v45 = vadd.f32 %v811_v41, %v418_v40 }
 0x393   : > { %v815_v46 = vpop.eup %814  ;;  %427 = vst [vmem:[#allocation3 + $0x28] sm:$0xff] %v425_v43  ;;  %v448_v47 = vmul.f32 %v813_v44, %v440_v39 }
 0x394   : > { %v817_v48 = vpop.eup %816  ;;  %428 = vst [vmem:[#allocation3 + $0x10] sm:$0xff] %v426_v45  ;;  %v449_v50 = vmul.f32 %v815_v46, %v441_v42 }
 0x395   : > { %v819_v51 = vpop.eup %818  ;;  %v456_v53 = vadd.f32 %v817_v48, %v448_v47 }
 0x396   : > { %v821_v54 = vpop.eup %820  ;;  %v457_v55 = vadd.f32 %v819_v51, %v449_v50 }
 0x397   : > { %v823_v56 = vpop.eup %822  ;;  %458 = vst [vmem:[#allocation3 + $0x8] sm:$0xff] %v456_v53  ;;  %v479_v57 = vmul.f32 %v821_v54, %v471_v49 }
 0x398   : > { %v825_v58 = vpop.eup %824  ;;  %459 = vst [vmem:[#allocation3] sm:$0xff] %v457_v55  ;;  %v480_v59 = vmul.f32 %v823_v56, %v472_v52 }
 0x399   : > { %v827_v60 = vpop.eup %826  ;;  %v487_v61 = vadd.f32 %v825_v58, %v479_v57 }
 0x39a   : > { %v488_v62 = vadd.f32 %v827_v60, %v480_v59 }
 0x39b   : > { %489 = vst [vmem:[#allocation3 + $0x18] sm:$0xff] %v487_v61 }
 0x39c   : > { %490 = vst [vmem:[#allocation3 + $0x20] sm:$0xff] %v488_v62 }
 0x39d PF: > { %p493_p12 = scmp.eq.s32.totalorder %s1008_s16, 2 }
 0x39f   : > { %p494_p13 = pnand %p493_p12, %p387_p5 }
 0x3a1   : > { %497 = sbr.rel (%p494_p13) target bundleno = 961 (0x3c1), region = 60 }
 0x3a6   : > { %v504_v63 = vld [vmem:[#allocation3 + $0x28] sm:$0xff]  ;;  %v505_v0 = vld [vmem:[#allocation3 + $0x10] sm:$0xff]  ;;  %v507_v2 = vld [vmem:[#allocation3] sm:$0xff] }
 0x3a7   : > { %828 = vlog2.f32 %v504_v63  ;;  %v506_v1 = vld [vmem:[#allocation3 + $0x8] sm:$0xff]  ;;  %v508_v3 = vld [vmem:[#allocation3 + $0x18] sm:$0xff]  ;;  %v509_v4 = vld [vmem:[#allocation3 + $0x20] sm:$0xff] }
 0x3a8   : > { %830 = vlog2.f32 %v505_v0  ;;  %v498_v6 = vld [vmem:[#allocation12] sm:$0xff]  ;;  %v499_v9 = vld [vmem:[#allocation12 + $0x8] sm:$0xff]  ;;  %v500_v12 = vld [vmem:[#allocation12 + $0x10] sm:$0xff] }
 0x3a9   : > { %832 = vlog2.f32 %v506_v1  ;;  %v501_v16 = vld [vmem:[#allocation12 + $0x18] sm:$0xff]  ;;  %v502_v20 = vld [vmem:[#allocation12 + $0x20] sm:$0xff]  ;;  %v503_v25 = vld [vmem:[#allocation12 + $0x28] sm:$0xff] }
 0x3aa   : > { %834 = vlog2.f32 %v507_v2 }
 0x3ab   : > { %836 = vlog2.f32 %v508_v3 }
 0x3ac   : > { %838 = vlog2.f32 %v509_v4 }
 0x3b4   : > { %v829_v5 = vpop.eup %828 }
 0x3b5   : > { %v831_v7 = vpop.eup %830  ;;  %v511_v8 = vmul.f32 0.6931472, %v829_v5 }
 0x3b6   : > { %v833_v10 = vpop.eup %832  ;;  %v513_v11 = vmul.f32 0.6931472, %v831_v7 }
 0x3b7   : > { %v835_v13 = vpop.eup %834  ;;  %v522_v14 = vadd.f32 %v511_v8, %v498_v6  ;;  %v515_v15 = vmul.f32 0.6931472, %v833_v10 }
 0x3b8   : > { %v837_v17 = vpop.eup %836  ;;  %v523_v18 = vadd.f32 %v513_v11, %v499_v9  ;;  %v517_v19 = vmul.f32 0.6931472, %v835_v13 }
 0x3b9   : > { %v839_v21 = vpop.eup %838  ;;  %v672_v22 = vadd.f32 -1.0986123, %v522_v14  ;;  %v524_v23 = vadd.f32 %v515_v15, %v500_v12  ;;  %v519_v24 = vmul.f32 0.6931472, %v837_v17 }
 0x3ba   : > { %v673_v26 = vadd.f32 -1.0986123, %v523_v18  ;;  %v525_v27 = vadd.f32 %v517_v19, %v501_v16  ;;  %v521_v28 = vmul.f32 0.6931472, %v839_v21 }
 0x3bb   : > { %534 = vst [vmem:[#allocation12] sm:$0xff] %v672_v22  ;;  %v674_v29 = vadd.f32 -1.0986123, %v524_v23  ;;  %v526_v30 = vadd.f32 %v519_v24, %v502_v20 }
 0x3bc   : > { %535 = vst [vmem:[#allocation12 + $0x8] sm:$0xff] %v673_v26  ;;  %v675_v31 = vadd.f32 -1.0986123, %v525_v27  ;;  %v527_v32 = vadd.f32 %v521_v28, %v503_v25 }
 0x3bd   : > { %536 = vst [vmem:[#allocation12 + $0x10] sm:$0xff] %v674_v29  ;;  %v676_v33 = vadd.f32 -1.0986123, %v526_v30 }
 0x3be   : > { %537 = vst [vmem:[#allocation12 + $0x18] sm:$0xff] %v675_v31  ;;  %v677_v34 = vadd.f32 -1.0986123, %v527_v32 }
 0x3bf   : > { %538 = vst [vmem:[#allocation12 + $0x20] sm:$0xff] %v676_v33 }
 0x3c0   : > { %539 = vst [vmem:[#allocation12 + $0x28] sm:$0xff] %v677_v34 }
 0x3c1 PF: > { %p711_p0 = scmp.eq.s32.totalorder %s1148_s5, 8  ;;  %s1034_s15 = smov [#allocation12]  }
 0x3c2   : > { %s547_s16 = sshll.u32 %s1034_s15, 4  ;;  %s548_s16 = int_to_ptr.vmem [resolvable:$true] %s547_s16 }
 0x3c3   : > { %s922_s29 = scalar_lea.vmem %s548_s16, 768  ;;  %p929_p11 = scmp.lt.s32.totalorder %s548_s16, %s548_s16 }
 0x3c4   : > { %p923_p1 = scmp.ne.s32.totalorder %s548_s16, %s922_s29  ;;  %p930_p8 = scmp.lt.s32.totalorder %s922_s29, %s922_s29 }
 0x3c6   : > { %p924_p2 = pnand %p923_p1, %p711_p0  ;;  %p931_p7 = por %p930_p8, %p929_p11 }
 0x3c8   : > { %p925_p4 = pneg %p924_p2 }
 0x3ca   : > { %p932_p3 = pnand %p931_p7, %p925_p4 }
 0x3cc   : > { %935 = shalt.err (!%p932_p3)
}
 0x3cd   : > { %694 = dma.vmem_to_hbm [thread:$0]  (%p711_p0), %s548_s16, 768, %s1267_s3, [#allocation8]  }
 0x3ce   : > { %987 = dma.done.wait (%p711_p0), [#allocation8], 768  }
 0x3cf   : > { %989 = vsyncadd (%p711_p0), [#allocation8], 4294966528 }
 0x3d0 PF: > { %s18_s19 = sadd.s32 1, %s1020_s19   ;;  %s1280_s12 = smov %s996_s13 }
 0x3d1   : > { %p15_p9 = scmp.ge.s32.totalorder %s18_s19, 11   ;;  %s1281_s13 = smov %s1000_s14 }
 0x3d2   : > { %s1282_s14 = smov %s1122_s7  ;;  %s1283_s15 = smov %s1012_s17 }
 0x3d3   : > { %s1284_s16 = smov %s1016_s18  ;;  %s1285_s17 = smov %s1288_s20 }
 0x3d4   : > { %s1286_s18 = smov %s1292_s21  ;;  %17 = sbr.rel (!%p15_p9) target bundleno = 9 (0x9), region = 104 }
 0x3d9   :  { %560 = vsyncpa [#allocation7], 1 }
 0x3da   :  { %562 = vsyncpa [#allocation7 + $0x1], 1 }
 0x3db   :  { %563 = vsyncpa [#allocation10], 1 }
 0x3dc   :  { %565 = vsyncpa [#allocation10 + $0x1], 1 }
 0x3dd   :  { %566 = vsyncpa [#allocation8], 1 }
 0x3de   :  { %568 = vsyncpa [#allocation8 + $0x1], 1 }

</bundles_post_ra>
